<compile_context>
chip_gen: v6e
topology: v6e:2x2x1
jax: 0.10.0
libtpu: 0.0.40
codegen_flags: <defaults>
</compile_context>

<pallas_src>
import jax
import jax.numpy as jnp
from jax.experimental import pallas as pl
from jax.experimental.pallas import tpu as pltpu

NEG_SLOPE = 0.01  # PyTorch nn.LeakyReLU default
BN_EPS = 1e-5     # PyTorch nn.BatchNorm1d default


def _leaky_relu(z):
    return jnp.where(z > 0, z, NEG_SLOPE * z)


def _round_up(n, m):
    return ((n + m - 1) // m) * m


def mlp_kernel(x_ref,
               w1_ref, t1_ref,
               w2_ref, t2_ref,
               w3_ref, t3_ref,
               wfc_ref, bfc_ref,
               o_ref):
    """Fused forward for one batch tile.

    x_ref:  (TB, in_dim) bf16
    wN_ref: (in, out)    bf16   -- BN scale pre-folded into columns
    tN_ref: (1, out)     f32    -- Linear bias + BN shift pre-folded
    wfc_ref:(H, 1)       f32
    bfc_ref:(1, 1)       f32
    o_ref:  (1, TB)      f32    -- lane-dense output slab
    """
    h = x_ref[...]  # bf16

    def block(h, w_ref, t_ref, cast_bf16):
        # MXU matmul (bf16 in, f32 accumulate), then folded-BN shift + LeakyReLU on VPU.
        z = jnp.dot(h, w_ref[...], preferred_element_type=jnp.float32) + t_ref[...]
        z = _leaky_relu(z)   # Dropout = identity in eval mode
        return z.astype(jnp.bfloat16) if cast_bf16 else z

    h = block(h, w1_ref, t1_ref, True)
    h = block(h, w2_ref, t2_ref, True)
    h = block(h, w3_ref, t3_ref, False)            # (TB, H) f32

    # Head: avoid an N=1 MXU matmul. Transpose on the XLU, scale rows by the fc
    # weight (VPU), cross-sublane reduce (XLU) -> lane-dense (1, TB) result.
    ht = h.T                                       # (H, TB) f32
    o_ref[...] = jnp.sum(ht * wfc_ref[...], axis=0, keepdims=True) + bfc_ref[...]


def deep_ff_classifier(x, params, *, tb=256):
    """x: (B, input_dim) f32.  Returns (B,) f32 — matches out.squeeze(1) (eval mode)."""
    B, in_dim = x.shape
    (w1, b1, g1, be1, m1, v1,
     w2, b2, g2, be2, m2, v2,
     w3, b3, g3, be3, m3, v3,
     wfc, bfc) = params
    H = w1.shape[0]

    # Fold BatchNorm (eval) into the preceding Linear:
    #   scale = gamma / sqrt(var + eps);  w' = w.T * scale (per out column)
    #   t'    = (b - mean) * scale + beta
    def fold(w, b, gamma, beta, mean, var):
        scale = gamma / jnp.sqrt(var + BN_EPS)
        w_folded = (w.T * scale[None, :]).astype(jnp.bfloat16)        # (in, out)
        t_folded = ((b - mean) * scale + beta)[None, :].astype(jnp.float32)
        return w_folded, t_folded

    w1f, t1f = fold(w1, b1, g1, be1, m1, v1)
    w2f, t2f = fold(w2, b2, g2, be2, m2, v2)
    w3f, t3f = fold(w3, b3, g3, be3, m3, v3)
    wfcf = wfc.T.astype(jnp.float32)               # (H, 1)
    bfcf = bfc.reshape(1, 1).astype(jnp.float32)   # (1, 1)

    # Batch tiling: lane-dense output requires TB % 128 == 0 when the grid has >1 step.
    if B > tb:
        TB = max(128, (tb // 128) * 128)
        Bp = _round_up(B, TB)
    else:
        TB = _round_up(B, 8)
        Bp = TB
    G = Bp // TB

    xp = x.astype(jnp.bfloat16)
    if Bp != B:
        xp = jnp.pad(xp, ((0, Bp - B), (0, 0)))

    flops = 2 * Bp * (in_dim * H + 2 * H * H + H)
    bytes_accessed = (xp.size * 2
                      + (w1f.size + w2f.size + w3f.size) * 2
                      + (t1f.size + t2f.size + t3f.size + wfcf.size + bfcf.size) * 4
                      + Bp * 4)

    const_map = lambda i: (0, 0)

    out = pl.pallas_call(
        mlp_kernel,
        out_shape=jax.ShapeDtypeStruct((1, Bp), jnp.float32),
        grid=(G,),
        in_specs=[
            pl.BlockSpec((TB, in_dim), lambda i: (i, 0)),   # x tile (pipelined)
            pl.BlockSpec(w1f.shape, const_map), pl.BlockSpec(t1f.shape, const_map),
            pl.BlockSpec(w2f.shape, const_map), pl.BlockSpec(t2f.shape, const_map),
            pl.BlockSpec(w3f.shape, const_map), pl.BlockSpec(t3f.shape, const_map),
            pl.BlockSpec(wfcf.shape, const_map), pl.BlockSpec(bfcf.shape, const_map),
        ],
        out_specs=pl.BlockSpec((1, TB), lambda i: (0, i)),  # lane-dense output slab
        compiler_params=pltpu.CompilerParams(
            dimension_semantics=("parallel",),
            vmem_limit_bytes=32 << 20,
        ),
        cost_estimate=pl.CostEstimate(
            flops=flops, transcendentals=0, bytes_accessed=bytes_accessed),
    )(xp, w1f, t1f, w2f, t2f, w3f, t3f, wfcf, bfcf)

    return out[0, :B]


def init_params(key, input_dim, hidden_dim):
    """Deterministic synthetic params matching the PyTorch module's shapes."""
    ks = jax.random.split(key, 12)

    def linear_init(kw, kb, fan_in, fan_out):
        bound = 1.0 / jnp.sqrt(fan_in)
        w = jax.random.uniform(kw, (fan_out, fan_in), jnp.float32, -bound, bound)
        b = jax.random.uniform(kb, (fan_out,), jnp.float32, -bound, bound)
        return w, b

    w1, b1 = linear_init(ks[0], ks[1], input_dim, hidden_dim)
    w2, b2 = linear_init(ks[2], ks[3], hidden_dim, hidden_dim)
    w3, b3 = linear_init(ks[4], ks[5], hidden_dim, hidden_dim)
    wfc, bfc = linear_init(ks[6], ks[7], hidden_dim, 1)

    def bn_init(kg, km):
        gamma = 1.0 + 0.1 * jax.random.normal(kg, (hidden_dim,), jnp.float32)
        beta = 0.05 * jax.random.normal(km, (hidden_dim,), jnp.float32)
        mean = 0.1 * jax.random.normal(jax.random.fold_in(kg, 1), (hidden_dim,), jnp.float32)
        var = 0.9 + 0.2 * jax.random.uniform(jax.random.fold_in(km, 1), (hidden_dim,), jnp.float32)
        return gamma, beta, mean, var

    g1, be1, m1, v1 = bn_init(ks[8], ks[9])
    g2, be2, m2, v2 = bn_init(ks[10], ks[11])
    g3, be3, m3, v3 = bn_init(jax.random.fold_in(ks[8], 7), jax.random.fold_in(ks[9], 7))

    return (w1, b1, g1, be1, m1, v1,
            w2, b2, g2, be2, m2, v2,
            w3, b3, g3, be3, m3, v3,
            wfc, bfc)


def reference_forward(x, params):
    """Pure-JAX f32 reference of the PyTorch forward (eval mode)."""
    (w1, b1, g1, be1, m1, v1,
     w2, b2, g2, be2, m2, v2,
     w3, b3, g3, be3, m3, v3,
     wfc, bfc) = params

    def block(h, w, b, g, be, m, v):
        z = h @ w.T + b
        z = g * (z - m) / jnp.sqrt(v + BN_EPS) + be
        return jnp.where(z > 0, z, NEG_SLOPE * z)

    h = block(x, w1, b1, g1, be1, m1, v1)
    h = block(h, w2, b2, g2, be2, m2, v2)
    h = block(h, w3, b3, g3, be3, m3, v3)
    return (h @ wfc.T + bfc)[:, 0]


if __name__ == "__main__":
    # TODO(synk): Dropout is modeled as identity (eval mode); training-mode dropout
    # and BatchNorm batch-stat updates are out of scope for this inference kernel.
    B, INPUT_DIM, HIDDEN = 256, 16, 128   # 2 batch tiles of 128 -> exercises the grid
    key = jax.random.PRNGKey(0)
    kx, kp = jax.random.split(key)

    x = jax.random.normal(kx, (B, INPUT_DIM), jnp.float32)
    params = init_params(kp, INPUT_DIM, HIDDEN)

    out = deep_ff_classifier(x, params, tb=128)
    out = jax.block_until_ready(out)

    ref = reference_forward(x, params)
    assert out.shape == (B,), out.shape
    # bf16 matmul path -> looser tolerance than the pure-f32 reference.
    assert jnp.allclose(out, ref, atol=5e-2, rtol=5e-2), (
        float(jnp.max(jnp.abs(out - ref))))
    print("KERNEL_OK")
</pallas_src>

<mosaic_0001>
module attributes {stable_mosaic.version = 11 : i64} {
  func.func @mlp_kernel(%arg0: i32, %arg1: memref<128x16xbf16, #tpu.memory_space<vmem>>, %arg2: memref<16x128xbf16, #tpu.memory_space<vmem>>, %arg3: memref<1x128xf32, #tpu.memory_space<vmem>>, %arg4: memref<128x128xbf16, #tpu.memory_space<vmem>>, %arg5: memref<1x128xf32, #tpu.memory_space<vmem>>, %arg6: memref<128x128xbf16, #tpu.memory_space<vmem>>, %arg7: memref<1x128xf32, #tpu.memory_space<vmem>>, %arg8: memref<128x1xf32, #tpu.memory_space<vmem>>, %arg9: memref<1x1xf32, #tpu.memory_space<vmem>>, %arg10: memref<1x128xf32, #tpu.memory_space<vmem>>) attributes {dimension_semantics = [#tpu.dimension_semantics<parallel>], iteration_bounds = array<i64: 2>, scalar_prefetch = 0 : i64, scratch_operands = 0 : i64, tpu.core_type = #tpu.core_type<tc>, window_params = [{transform_indices = @transform_0, window_bounds = array<i64: 128, 16>}, {pipeline_mode = #tpu.pipeline_mode<synchronous>, transform_indices = @transform_1, window_bounds = array<i64: 16, 128>}, {pipeline_mode = #tpu.pipeline_mode<synchronous>, transform_indices = @transform_2, window_bounds = array<i64: 1, 128>}, {pipeline_mode = #tpu.pipeline_mode<synchronous>, transform_indices = @transform_3, window_bounds = array<i64: 128, 128>}, {pipeline_mode = #tpu.pipeline_mode<synchronous>, transform_indices = @transform_4, window_bounds = array<i64: 1, 128>}, {pipeline_mode = #tpu.pipeline_mode<synchronous>, transform_indices = @transform_5, window_bounds = array<i64: 128, 128>}, {pipeline_mode = #tpu.pipeline_mode<synchronous>, transform_indices = @transform_6, window_bounds = array<i64: 1, 128>}, {pipeline_mode = #tpu.pipeline_mode<synchronous>, transform_indices = @transform_7, window_bounds = array<i64: 128, 1>}, {pipeline_mode = #tpu.pipeline_mode<synchronous>, transform_indices = @transform_8, window_bounds = array<i64: 1, 1>}, {transform_indices = @transform_9, window_bounds = array<i64: 1, 128>}]} {
    %c0 = arith.constant 0 : index
    %c0_0 = arith.constant 0 : index
    %0 = vector.load %arg1[%c0, %c0_0] : memref<128x16xbf16, #tpu.memory_space<vmem>>, vector<128x16xbf16>
    %c0_1 = arith.constant 0 : index
    %c0_2 = arith.constant 0 : index
    %1 = vector.load %arg2[%c0_1, %c0_2] : memref<16x128xbf16, #tpu.memory_space<vmem>>, vector<16x128xbf16>
    %cst = arith.constant dense<0.000000e+00> : vector<128x128xf32>
    %2 = tpu.matmul %0, %1, %cst {dimension_numbers = #tpu.dot_dimension_numbers<[1], [0], [0], [1], [0, 0, 1, 1], [], []>} : vector<128x16xbf16>, vector<16x128xbf16>, vector<128x128xf32> -> vector<128x128xf32>
    %c0_3 = arith.constant 0 : index
    %c0_4 = arith.constant 0 : index
    %3 = vector.load %arg3[%c0_3, %c0_4] : memref<1x128xf32, #tpu.memory_space<vmem>>, vector<1x128xf32>
    %4 = vector.broadcast %3 : vector<1x128xf32> to vector<128x128xf32>
    %5 = arith.addf %2, %4 : vector<128x128xf32>
    %cst_5 = arith.constant 0.000000e+00 : f32
    %6 = vector.broadcast %cst_5 : f32 to vector<128x128xf32>
    %7 = arith.cmpf ogt, %5, %6 : vector<128x128xf32>
    %cst_6 = arith.constant 0.00999999977 : f32
    %8 = vector.broadcast %cst_6 : f32 to vector<128x128xf32>
    %9 = arith.mulf %8, %5 : vector<128x128xf32>
    %10 = arith.select %7, %5, %9 : vector<128x128xi1>, vector<128x128xf32>
    %11 = arith.truncf %10 : vector<128x128xf32> to vector<128x128xbf16>
    %c0_7 = arith.constant 0 : index
    %c0_8 = arith.constant 0 : index
    %12 = vector.load %arg4[%c0_7, %c0_8] : memref<128x128xbf16, #tpu.memory_space<vmem>>, vector<128x128xbf16>
    %cst_9 = arith.constant dense<0.000000e+00> : vector<128x128xf32>
    %13 = tpu.matmul %11, %12, %cst_9 {dimension_numbers = #tpu.dot_dimension_numbers<[1], [0], [0], [1], [0, 0, 1, 1], [], []>} : vector<128x128xbf16>, vector<128x128xbf16>, vector<128x128xf32> -> vector<128x128xf32>
    %c0_10 = arith.constant 0 : index
    %c0_11 = arith.constant 0 : index
    %14 = vector.load %arg5[%c0_10, %c0_11] : memref<1x128xf32, #tpu.memory_space<vmem>>, vector<1x128xf32>
    %15 = vector.broadcast %14 : vector<1x128xf32> to vector<128x128xf32>
    %16 = arith.addf %13, %15 : vector<128x128xf32>
    %cst_12 = arith.constant 0.000000e+00 : f32
    %17 = vector.broadcast %cst_12 : f32 to vector<128x128xf32>
    %18 = arith.cmpf ogt, %16, %17 : vector<128x128xf32>
    %cst_13 = arith.constant 0.00999999977 : f32
    %19 = vector.broadcast %cst_13 : f32 to vector<128x128xf32>
    %20 = arith.mulf %19, %16 : vector<128x128xf32>
    %21 = arith.select %18, %16, %20 : vector<128x128xi1>, vector<128x128xf32>
    %22 = arith.truncf %21 : vector<128x128xf32> to vector<128x128xbf16>
    %c0_14 = arith.constant 0 : index
    %c0_15 = arith.constant 0 : index
    %23 = vector.load %arg6[%c0_14, %c0_15] : memref<128x128xbf16, #tpu.memory_space<vmem>>, vector<128x128xbf16>
    %cst_16 = arith.constant dense<0.000000e+00> : vector<128x128xf32>
    %24 = tpu.matmul %22, %23, %cst_16 {dimension_numbers = #tpu.dot_dimension_numbers<[1], [0], [0], [1], [0, 0, 1, 1], [], []>} : vector<128x128xbf16>, vector<128x128xbf16>, vector<128x128xf32> -> vector<128x128xf32>
    %c0_17 = arith.constant 0 : index
    %c0_18 = arith.constant 0 : index
    %25 = vector.load %arg7[%c0_17, %c0_18] : memref<1x128xf32, #tpu.memory_space<vmem>>, vector<1x128xf32>
    %26 = vector.broadcast %25 : vector<1x128xf32> to vector<128x128xf32>
    %27 = arith.addf %24, %26 : vector<128x128xf32>
    %cst_19 = arith.constant 0.000000e+00 : f32
    %28 = vector.broadcast %cst_19 : f32 to vector<128x128xf32>
    %29 = arith.cmpf ogt, %27, %28 : vector<128x128xf32>
    %cst_20 = arith.constant 0.00999999977 : f32
    %30 = vector.broadcast %cst_20 : f32 to vector<128x128xf32>
    %31 = arith.mulf %30, %27 : vector<128x128xf32>
    %32 = arith.select %29, %27, %31 : vector<128x128xi1>, vector<128x128xf32>
    %33 = tpu.transpose %32, [1, 0] : vector<128x128xf32> -> vector<128x128xf32>
    %c0_21 = arith.constant 0 : index
    %c0_22 = arith.constant 0 : index
    %34 = vector.load %arg8[%c0_21, %c0_22] : memref<128x1xf32, #tpu.memory_space<vmem>>, vector<128x1xf32>
    %35 = vector.broadcast %34 : vector<128x1xf32> to vector<128x128xf32>
    %36 = arith.mulf %33, %35 : vector<128x128xf32>
    %cst_23 = arith.constant dense<0.000000e+00> : vector<128xf32>
    %37 = vector.multi_reduction <add>, %36, %cst_23 [0] : vector<128x128xf32> to vector<128xf32>
    %38 = vector.shape_cast %37 : vector<128xf32> to vector<1x128xf32>
    %c0_24 = arith.constant 0 : index
    %c0_25 = arith.constant 0 : index
    %39 = vector.load %arg9[%c0_24, %c0_25] : memref<1x1xf32, #tpu.memory_space<vmem>>, vector<1x1xf32>
    %40 = vector.broadcast %39 : vector<1x1xf32> to vector<1x128xf32>
    %41 = arith.addf %38, %40 : vector<1x128xf32>
    %c0_26 = arith.constant 0 : index
    %c0_27 = arith.constant 0 : index
    %42 = vector.load %arg10[%c0_26, %c0_27] : memref<1x128xf32, #tpu.memory_space<vmem>>, vector<1x128xf32>
    tpu.vector_store %arg10[%c0_26, %c0_27], %41 {strides = array<i32>} : memref<1x128xf32, #tpu.memory_space<vmem>>, vector<1x128xf32>,
    return
  }
  func.func @transform_0(%arg0: i32) -> (i32, i32) {
    %c0_i32 = arith.constant 0 : i32
    %c0_i32_0 = arith.constant 0 : i32
    return %arg0, %c0_i32 : i32, i32
  }
  func.func @transform_1(%arg0: i32) -> (i32, i32) {
    %c0_i32 = arith.constant 0 : i32
    %c0_i32_0 = arith.constant 0 : i32
    %c0_i32_1 = arith.constant 0 : i32
    return %c0_i32, %c0_i32_0 : i32, i32
  }
  func.func @transform_2(%arg0: i32) -> (i32, i32) {
    %c0_i32 = arith.constant 0 : i32
    %c0_i32_0 = arith.constant 0 : i32
    %c0_i32_1 = arith.constant 0 : i32
    return %c0_i32, %c0_i32_0 : i32, i32
  }
  func.func @transform_3(%arg0: i32) -> (i32, i32) {
    %c0_i32 = arith.constant 0 : i32
    %c0_i32_0 = arith.constant 0 : i32
    %c0_i32_1 = arith.constant 0 : i32
    return %c0_i32, %c0_i32_0 : i32, i32
  }
  func.func @transform_4(%arg0: i32) -> (i32, i32) {
    %c0_i32 = arith.constant 0 : i32
    %c0_i32_0 = arith.constant 0 : i32
    %c0_i32_1 = arith.constant 0 : i32
    return %c0_i32, %c0_i32_0 : i32, i32
  }
  func.func @transform_5(%arg0: i32) -> (i32, i32) {
    %c0_i32 = arith.constant 0 : i32
    %c0_i32_0 = arith.constant 0 : i32
    %c0_i32_1 = arith.constant 0 : i32
    return %c0_i32, %c0_i32_0 : i32, i32
  }
  func.func @transform_6(%arg0: i32) -> (i32, i32) {
    %c0_i32 = arith.constant 0 : i32
    %c0_i32_0 = arith.constant 0 : i32
    %c0_i32_1 = arith.constant 0 : i32
    return %c0_i32, %c0_i32_0 : i32, i32
  }
  func.func @transform_7(%arg0: i32) -> (i32, i32) {
    %c0_i32 = arith.constant 0 : i32
    %c0_i32_0 = arith.constant 0 : i32
    %c0_i32_1 = arith.constant 0 : i32
    return %c0_i32, %c0_i32_0 : i32, i32
  }
  func.func @transform_8(%arg0: i32) -> (i32, i32) {
    %c0_i32 = arith.constant 0 : i32
    %c0_i32_0 = arith.constant 0 : i32
    %c0_i32_1 = arith.constant 0 : i32
    return %c0_i32, %c0_i32_0 : i32, i32
  }
  func.func @transform_9(%arg0: i32) -> (i32, i32) {
    %c0_i32 = arith.constant 0 : i32
    %c0_i32_0 = arith.constant 0 : i32
    return %c0_i32, %arg0 : i32, i32
  }
}

</mosaic_0001>

<bundles_post_ra>
// kernel: tpu_custom_call.1
= control target key start
LH: loop header
LB: loop body
LE: loop exit
PB: predicated region body
PF: predicated region fallthrough
CT: control target
= control target key end

     0   :  { %s1879_s0 = inlined_call_operand.vmem [shape: bf16[256,16], index: 0, kind: input, shape index: {}]   ;;  %s1880_s1 = inlined_call_operand.vmem [shape: bf16[16,128], index: 1, kind: input, shape index: {}]   ;;  %s1881_s2 = inlined_call_operand.vmem [shape: f32[1,128], index: 2, kind: input, shape index: {}]   ;;  %s1882_s3 = inlined_call_operand.vmem [shape: bf16[128,128], index: 3, kind: input, shape index: {}]   ;;  %s1883_s4 = inlined_call_operand.vmem [shape: f32[1,128], index: 4, kind: input, shape index: {}]   ;;  %s1884_s5 = inlined_call_operand.vmem [shape: bf16[128,128], index: 5, kind: input, shape index: {}]   ;;  %s1885_s6 = inlined_call_operand.vmem [shape: f32[1,128], index: 6, kind: input, shape index: {}]   ;;  %s1886_s7 = inlined_call_operand.vmem [shape: f32[128,1], index: 7, kind: input, shape index: {}]   ;;  %s1887_s8 = inlined_call_operand.<no memory space> [shape: f32[1,1], index: 8, kind: input, shape index: {}]   ;;  %s1888_s9 = inlined_call_operand.hbm [shape: f32[1,256], index: 9, kind: output, shape index: {}]  }
   0x1   :  { %v14_v0 = vstv %s1887_s8 }
   0x2   :  { %15 = vst [vmem:[#allocation2] sm:$0x1] %v14_v0 }
   0x3   :  { %16 = vsyncpa [#allocation4], 0 }
   0x4   :  { %18 = vsyncpa [#allocation4 + $0x1], 0  ;;  %s1621_s11 = smov 0   ;;  %s1623_s12 = smov 0  }
   0x5   :  { %s1625_s13 = smov 0   ;;  %s1627_s14 = smov 0  }
   0x6 LB: > { %s1268_s8 = sadd.s32 4294967295, %s1564_s14   ;;  %s1269_s15 = sadd.s32 4294967294, %s1564_s14   ;;  %s1564_s14 = sphi %s1627_s14, %s1894_s14   ;;  %s1560_s13 = sphi %s1625_s13, %s1893_s13   ;;  %s1556_s12 = sphi %s1623_s12, %s1892_s12   ;;  %s1552_s11 = sphi %s1621_s11, %s1891_s11  }
   0x7   : > { %s1644_s16 = sadd.s32 1, %s1564_s14   ;;  %s225_s17 = sadd.s32 1, %s1560_s13 }
   0x8   : > { %s222_s18 = ssub.s32 %s1564_s14, %s1644_s16  ;;  %p235_p0 = scmp.ne.s32.totalorder %s1560_s13, %s1556_s12 }
   0x9   : > { %p223_p1 = scmp.eq.s32.totalorder %s222_s18, 0  ;;  %p236_p2 = scmp.eq.s32.totalorder %s1268_s8, 1 }
   0xa   : > { %p241_p3 = scmp.ne.s32.totalorder %s1556_s12, %s1552_s11  ;;  %p242_p4 = scmp.eq.s32.totalorder %s1269_s15, 1 }
   0xb   : > { %s1654_s19 = scalar_select %p223_p1, %s1560_s13, %s225_s17  }
   0xc   : > { %p1656_p5 = por %p236_p2, %p235_p0  ;;  %p1660_p6 = por %p242_p4, %p241_p3 }
   0xd   : > { %p1272_p7 = scmp.ge.s32.totalorder %s1564_s14, 1  ;;  %p293_p8 = scmp.lt.s32.totalorder %s1564_s14, 3 }
   0xf   : > { %p294_p9 = pnand %p1272_p7, %p293_p8 }
  0x10   : > { %s1669_s24 = sshll.u32 (!%p294_p9), %s1268_s8, 4  ;;  %s326_s18 = sand.u32 (!%p294_p9), 1, %s1556_s12  }
  0x11   : > { %297 = sbr.rel (%p294_p9) target bundleno = 885 (0x375), region = 56  ;;  %p329_p10 = scmp.lt.s32.totalorder (!%p294_p9), %s1669_s24, 31 }
  0x12   : > { %s327_s22 = scalar_lea.vmem (!%p294_p9), [#allocation3], %s326_s18  ;;  %s1202_s28 = scalar_lea.sflag (!%p294_p9), [#allocation4], %s326_s18 }
  0x13   : > { %s1214_s23 = sshll.u32 (!%p294_p9), %s327_s22, 4  ;;  %s1215_s23 = int_to_ptr.vmem [resolvable:$true] %s1214_s23 }
  0x14   : > { %s1504_s29 = scalar_lea.vmem (!%p294_p9), %s1215_s23, 16 }
  0x15   : > { %p1505_p11 = scmp.ne.s32.totalorder (!%p294_p9), %s1215_s23, %s1504_s29 }
  0x16   : > { %v1479_v1 = vld [vmem:[%s1880_s1] sm:$0xff]   ;;  %v1488_v2 = vld [vmem:[%s1882_s3 + $0x38] sm:$0xff]   ;;  %s330_s27 = scalar_select %p329_p10, %s1669_s24, 31  ;;  %v1489_v3 = vld [vmem:[%s1882_s3 + $0x30] sm:$0xff]   ;;  %vm406_vm0 = vcmask 130048  }
  0x17   : > { %1355 = vmatprep.subr.bf16.mxu0 %v1479_v1  ;;  %1373 = vmatprep.subr.bf16.mxu1 %v1488_v2  ;;  %v1490_v4 = vld [vmem:[%s1882_s3 + $0x28] sm:$0xff]   ;;  %v1491_v8 = vld [vmem:[%s1882_s3 + $0x20] sm:$0xff]   ;;  %v1492_v9 = vld [vmem:[%s1882_s3 + $0x18] sm:$0xff]   ;;  %p1506_p12 = pnand %p1505_p11, %p1656_p5 }
  0x18   : > { %1356 = vmatpush3.bf16.msra.mxu0 %v1479_v1  ;;  %s1274_s30 = sshll.u32 %s330_s27, 2  ;;  %1374 = vmatpush3.bf16.msra.mxu1 %v1488_v2  ;;  %v1493_v15 = vld [vmem:[%s1882_s3 + $0x10] sm:$0xff]   ;;  %v1494_v16 = vld [vmem:[%s1882_s3 + $0x8] sm:$0xff]   ;;  %v1495_v17 = vld [vmem:[%s1882_s3] sm:$0xff]   ;;  %s1212_s27 = scalar_lea.hbm %s1888_s9, %s1669_s24 }
  0x19   : > { %s332_s15 = scalar_lea.vmem %s1879_s0, %s1274_s30  ;;  %1375 = vmatprep.subr.bf16.mxu1 %v1489_v3  ;;  %v1496_v18 = vld [vmem:[%s1884_s5 + $0x38] sm:$0xff]   ;;  %v1497_v19 = vld [vmem:[%s1884_s5 + $0x30] sm:$0xff]   ;;  %v1498_v20 = vld [vmem:[%s1884_s5 + $0x28] sm:$0xff]   ;;  %p1507_p13 = pneg %p1506_p12 }
  0x1a   : > { %v1480_v5 = vld [vmem:[%s332_s15] sm:$0xff]   ;;  %v1481_v6 = vld [vmem:[%s332_s15 + $0x8] sm:$0xff]   ;;  %v1482_v7 = vld [vmem:[%s332_s15 + $0x10] sm:$0xff]   ;;  %1405 = vmatprep.subr.bf16.mxu0 %v1496_v18  ;;  %s1567_s30 = smov [#allocation3]  }
  0x1b   : > { %1357 = vmatprep.mubr.msk.bf16.mxu0 %vm406_vm0, %v1480_v5  ;;  %v1483_v10 = vld [vmem:[%s332_s15 + $0x18] sm:$0xff]   ;;  %v1484_v11 = vld [vmem:[%s332_s15 + $0x20] sm:$0xff]   ;;  %v1485_v12 = vld [vmem:[%s332_s15 + $0x28] sm:$0xff]   ;;  %s1508_s10 = sshll.u32 %s1567_s30, 4  ;;  %s1509_s10 = int_to_ptr.vmem [resolvable:$false] %s1508_s10 }
  0x1c   : > { %1376 = vmatpush3.bf16.msra.mxu1 %v1489_v3  ;;  %1358 = vmatmul.mubr.msk.bf16.vlgmr.msra.gmra.mxu0 %vm406_vm0, %v1481_v6  ;;  %v1486_v13 = vld [vmem:[%s332_s15 + $0x30] sm:$0xff]   ;;  %v1487_v14 = vld [vmem:[%s332_s15 + $0x38] sm:$0xff]   ;;  %v1499_v21 = vld [vmem:[%s1884_s5 + $0x20] sm:$0xff]   ;;  %s1510_s8 = scalar_lea.vmem %s1509_s10, 32  ;;  %p1511_p0 = scmp.lt.s32.totalorder %s1215_s23, %s1509_s10 }
  0x1d   : > { %1377 = vmatprep.subr.bf16.mxu1 %v1490_v4  ;;  %1361 = vmatprep.mubr.msk.bf16.mxu0 %vm406_vm0, %v1482_v7  ;;  %v1500_v22 = vld [vmem:[%s1884_s5 + $0x18] sm:$0xff]   ;;  %v1726_v23 = vld [vmem:[%s1881_s2] ss:$0 sm:$0xff]  ;;  %p1512_p1 = scmp.lt.s32.totalorder %s1510_s8, %s1504_s29 }
  0x1e   : > { %1406 = vmatpush3.bf16.msra.mxu0 %v1496_v18 }
  0x1f   : > { %1407 = vmatprep.subr.bf16.mxu0 %v1497_v19  ;;  %p1513_p2 = por %p1512_p1, %p1511_p0 }
  0x20   : > { %1378 = vmatpush3.bf16.msra.mxu1 %v1490_v4 }
  0x21   : > { %1379 = vmatprep.subr.bf16.mxu1 %v1491_v8  ;;  %p1514_p3 = pnand %p1513_p2, %p1507_p13 }
  0x22   : > { %1408 = vmatpush3.bf16.msra.mxu0 %v1497_v19 }
  0x23   : > { %1409 = vmatprep.subr.bf16.mxu0 %v1498_v20 }
  0x24   : > { %1380 = vmatpush3.bf16.msra.mxu1 %v1491_v8  ;;  %1362 = vmatmul.mubr.msk.bf16.gmra.mxu0 %vm406_vm0, %v1483_v10 }
  0x25   : > { %1381 = vmatprep.subr.bf16.mxu1 %v1492_v9  ;;  %1365 = vmatprep.mubr.msk.bf16.mxu0 %vm406_vm0, %v1484_v11 }
  0x26   : > { %1410 = vmatpush3.bf16.msra.mxu0 %v1498_v20 }
  0x27   : > { %1411 = vmatprep.subr.bf16.mxu0 %v1499_v21 }
  0x28   : > { %1382 = vmatpush3.bf16.msra.mxu1 %v1492_v9 }
  0x29   : > { %1383 = vmatprep.subr.bf16.mxu1 %v1493_v15 }
  0x2a   : > { %1412 = vmatpush3.bf16.msra.mxu0 %v1499_v21 }
  0x2b   : > { %1413 = vmatprep.subr.bf16.mxu0 %v1500_v22 }
  0x2c   : > { %1366 = vmatmul.mubr.msk.bf16.gmra.mxu0 %vm406_vm0, %v1485_v12  ;;  %1384 = vmatpush3.bf16.msra.mxu1 %v1493_v15 }
  0x2d   : > { %1369 = vmatprep.mubr.msk.bf16.mxu0 %vm406_vm0, %v1486_v13  ;;  %1385 = vmatprep.subr.bf16.mxu1 %v1494_v16 }
  0x2e   : > { %1414 = vmatpush3.bf16.msra.mxu0 %v1500_v22 }
  0x30   : > { %1386 = vmatpush3.bf16.msra.mxu1 %v1494_v16 }
  0x31   : > { %1387 = vmatprep.subr.bf16.mxu1 %v1495_v17 }
  0x34   : > { %1370 = vmatmul.mubr.msk.bf16.gmra.mxu0 %vm406_vm0, %v1487_v14  ;;  %1388 = vmatpush3.bf16.msra.mxu1 %v1495_v17 }
  0xdc   : > { %v1359_v24 = vpop.f32.mrf.mxu0 }
  0xdd   : > { %v474_v25 = vadd.f32 %v1359_v24, %v1726_v23 }
  0xde   : > { %v465_v26 = vpop.f32.mrf.mxu0 }
  0xdf   : > { %v466_v27 = vadd.f32 %v1726_v23, %v465_v26  ;;  %v546_v30 = vmul.f32 0.01, %v474_v25  ;;  %vm530_vm2 = vcmp.gt.f32.partialorder %v474_v25, 0.0 }
  0xe0   : > { %v1360_v28 = vpop.f32.mrf.mxu0 }
  0xe1   : > { %v477_v29 = vadd.f32 %v1360_v28, %v1726_v23  ;;  %v544_v32 = vmul.f32 0.01, %v466_v27  ;;  %vm528_vm3 = vcmp.gt.f32.partialorder %v466_v27, 0.0  ;;  %v562_v43 = vsel %vm530_vm2, %v474_v25, %v546_v30 }
  0xe2   : > { %v468_v31 = vpop.f32.mrf.mxu0 }
  0xe3   : > { %vm531_vm1 = vcmp.gt.f32.partialorder %v477_v29, 0.0  ;;  %v547_v33 = vmul.f32 0.01, %v477_v29  ;;  %v469_v34 = vadd.f32 %v1726_v23, %v468_v31  ;;  %v560_v41 = vsel %vm528_vm3, %v466_v27, %v544_v32 }
  0xe4   : > { %v1363_v35 = vpop.f32.mrf.mxu0 }
  0xe5   : > { %v545_v36 = vmul.f32 0.01, %v469_v34  ;;  %v490_v37 = vadd.f32 %v1363_v35, %v1726_v23  ;;  %vm529_vm4 = vcmp.gt.f32.partialorder %v469_v34, 0.0  ;;  %v563_v38 = vsel %vm531_vm1, %v477_v29, %v547_v33  ;;  %v1501_v33 = vld [vmem:[%s1884_s5 + $0x10] sm:$0xff]   ;;  %v1056_v35 = vld [vmem:[%s1886_s7] sm:$0xff] }
  0xe6   : > { %v481_v39 = vpop.f32.mrf.mxu0  ;;  %v577_v47 = vpack.c.bf16 %v563_v38, %v562_v43  ;;  %1415 = vmatprep.subr.bf16.mxu0 %v1501_v33  ;;  %v1058_v38 = vld [vmem:[%s1886_s7 + $0x10] sm:$0xff] }
  0xe7   : > { %v482_v40 = vadd.f32 %v1726_v23, %v481_v39  ;;  %v561_v42 = vsel %vm529_vm4, %v469_v34, %v545_v36  ;;  %v550_v44 = vmul.f32 0.01, %v490_v37  ;;  %vm534_vm5 = vcmp.gt.f32.partialorder %v490_v37, 0.0  ;;  %1416 = vmatpush3.bf16.msra.mxu0 %v1501_v33  ;;  %v1503_v34 = vld [vmem:[%s1884_s5] sm:$0xff]   ;;  %v1059_v39 = vld [vmem:[%s1886_s7 + $0x18] sm:$0xff] }
  0xe8   : > { %v1364_v45 = vpop.f32.mrf.mxu0  ;;  %v576_v46 = vpack.c.bf16 %v561_v42, %v560_v41  ;;  %v1566_v36 = vmov 0   ;;  %v1061_v41 = vld [vmem:[%s1886_s7 + $0x28] sm:$0xff]  ;;  %v1062_v42 = vld [vmem:[%s1886_s7 + $0x30] sm:$0xff] }
  0xe9   : > { %vm532_vm6 = vcmp.gt.f32.partialorder %v482_v40, 0.0  ;;  %v548_v48 = vmul.f32 0.01, %v482_v40  ;;  %v493_v49 = vadd.f32 %v1364_v45, %v1726_v23  ;;  %v566_v55 = vsel %vm534_vm5, %v490_v37, %v550_v44  ;;  %1477 = vset.pattern.permute.xlu1 %v1566_v36  ;;  %v1057_v37 = vld [vmem:[%s1886_s7 + $0x8] sm:$0xff]  ;;  %v1778_v44 = vld [vmem:[%s1883_s4] ss:$0 sm:$0xff] }
  0xea   : > { %v484_v50 = vpop.f32.mrf.mxu0  ;;  %1389 = vmatprep.mubr.bf16.mxu1 %v576_v46  ;;  %1074 = vperm.xlu1 %1477, %v1056_v35  }
  0xeb   : > { %vm535_vm7 = vcmp.gt.f32.partialorder %v493_v49, 0.0  ;;  %v551_v51 = vmul.f32 0.01, %v493_v49  ;;  %v485_v52 = vadd.f32 %v1726_v23, %v484_v50  ;;  %1390 = vmatmul.mubr.bf16.vlgmr.msra.gmra.mxu1 %v577_v47  ;;  %v564_v54 = vsel %vm532_vm6, %v482_v40, %v548_v48  ;;  %v1060_v40 = vld [vmem:[%s1886_s7 + $0x20] sm:$0xff] }
  0xec   : > { %v1367_v53 = vpop.f32.mrf.mxu0 }
  0xed   : > { %vm533_vm8 = vcmp.gt.f32.partialorder %v485_v52, 0.0  ;;  %v549_v56 = vmul.f32 0.01, %v485_v52  ;;  %v506_v57 = vadd.f32 %v1367_v53, %v1726_v23  ;;  %v567_v58 = vsel %vm535_vm7, %v493_v49, %v551_v51 }
  0xee   : > { %v497_v59 = vpop.f32.mrf.mxu0  ;;  %v579_v62 = vpack.c.bf16 %v567_v58, %v566_v55  ;;  %1079 = vperm.xlu1 %1477, %v1057_v37  }
  0xef   : > { %v498_v60 = vadd.f32 %v1726_v23, %v497_v59  ;;  %v565_v61 = vsel %vm533_vm8, %v485_v52, %v549_v56  ;;  %v554_v63 = vmul.f32 0.01, %v506_v57  ;;  %vm538_vm9 = vcmp.gt.f32.partialorder %v506_v57, 0.0 }
  0xf0   : > { %v1368_v0 = vpop.f32.mrf.mxu0  ;;  %v578_v1 = vpack.c.bf16 %v565_v61, %v564_v54 }
  0xf1   : > { %vm536_vm10 = vcmp.gt.f32.partialorder %v498_v60, 0.0  ;;  %v552_v2 = vmul.f32 0.01, %v498_v60  ;;  %v509_v3 = vadd.f32 %v1368_v0, %v1726_v23  ;;  %v570_v9 = vsel %vm538_vm9, %v506_v57, %v554_v63 }
  0xf2   : > { %v500_v4 = vpop.f32.mrf.mxu0  ;;  %1393 = vmatprep.mubr.bf16.mxu1 %v578_v1  ;;  %1084 = vperm.xlu1 %1477, %v1058_v38  }
  0xf3   : > { %vm539_vm11 = vcmp.gt.f32.partialorder %v509_v3, 0.0  ;;  %v555_v5 = vmul.f32 0.01, %v509_v3  ;;  %v501_v6 = vadd.f32 %v1726_v23, %v500_v4  ;;  %1394 = vmatmul.mubr.bf16.gmra.mxu1 %v579_v62  ;;  %v568_v8 = vsel %vm536_vm10, %v498_v60, %v552_v2 }
  0xf4   : > { %v1371_v7 = vpop.f32.mrf.mxu0 }
  0xf5   : > { %vm537_vm12 = vcmp.gt.f32.partialorder %v501_v6, 0.0  ;;  %v553_v10 = vmul.f32 0.01, %v501_v6  ;;  %v522_v11 = vadd.f32 %v1371_v7, %v1726_v23  ;;  %v571_v12 = vsel %vm539_vm11, %v509_v3, %v555_v5 }
  0xf6   : > { %v513_v13 = vpop.f32.mrf.mxu0  ;;  %v581_v16 = vpack.c.bf16 %v571_v12, %v570_v9  ;;  %1089 = vperm.xlu1 %1477, %v1059_v39  }
  0xf7   : > { %v514_v14 = vadd.f32 %v1726_v23, %v513_v13  ;;  %v569_v15 = vsel %vm537_vm12, %v501_v6, %v553_v10  ;;  %v558_v17 = vmul.f32 0.01, %v522_v11  ;;  %vm542_vm13 = vcmp.gt.f32.partialorder %v522_v11, 0.0 }
  0xf8   : > { %v1372_v18 = vpop.f32.mrf.mxu0  ;;  %v580_v19 = vpack.c.bf16 %v569_v15, %v568_v8 }
  0xf9   : > { %v556_v20 = vmul.f32 0.01, %v514_v14  ;;  %v525_v21 = vadd.f32 %v1372_v18, %v1726_v23  ;;  %vm540_vm14 = vcmp.gt.f32.partialorder %v514_v14, 0.0  ;;  %v574_v26 = vsel %vm542_vm13, %v522_v11, %v558_v17 }
  0xfa   : > { %v516_v22 = vpop.f32.mrf.mxu0  ;;  %1397 = vmatprep.mubr.bf16.mxu1 %v580_v19  ;;  %1094 = vperm.xlu1 %1477, %v1060_v40  }
  0xfb   : > { %vm543_vm15 = vcmp.gt.f32.partialorder %v525_v21, 0.0  ;;  %v559_v24 = vmul.f32 0.01, %v525_v21  ;;  %v517_v25 = vadd.f32 %v1726_v23, %v516_v22  ;;  %1398 = vmatmul.mubr.bf16.gmra.mxu1 %v581_v16  ;;  %v572_v28 = vsel %vm540_vm14, %v514_v14, %v556_v20  ;;  %v1502_v23 = vld [vmem:[%s1884_s5 + $0x8] sm:$0xff]  }
  0xfc   : > { %1417 = vmatprep.subr.bf16.mxu0 %v1502_v23 }
  0xfd   : > { %vm541_vm0 = vcmp.gt.f32.partialorder %v517_v25, 0.0  ;;  %v557_v27 = vmul.f32 0.01, %v517_v25  ;;  %v575_v29 = vsel %vm543_vm15, %v525_v21, %v559_v24  ;;  %1418 = vmatpush3.bf16.msra.mxu0 %v1502_v23 }
  0xfe   : > { %v583_v31 = vpack.c.bf16 %v575_v29, %v574_v26  ;;  %1419 = vmatprep.subr.bf16.mxu0 %v1503_v34  ;;  %1099 = vperm.xlu1 %1477, %v1061_v41  }
  0xff   : > { %v573_v30 = vsel %vm541_vm0, %v517_v25, %v557_v27 }
 0x100   : > { %v582_v32 = vpack.c.bf16 %v573_v30, %v572_v28 }
 0x101   : > { %1420 = vmatpush3.bf16.msra.mxu0 %v1503_v34 }
 0x102   : > { %1401 = vmatprep.mubr.bf16.mxu1 %v582_v32  ;;  %1104 = vperm.xlu1 %1477, %v1062_v42  }
 0x103   : > { %1402 = vmatmul.mubr.bf16.gmra.mxu1 %v583_v31 }
 0x1ab   : > { %v1391_v43 = vpop.f32.mrf.mxu1 }
 0x1ac   : > { %v698_v47 = vadd.f32 %v1391_v43, %v1778_v44 }
 0x1ad   : > { %v689_v45 = vpop.f32.mrf.mxu1 }
 0x1ae   : > { %v690_v46 = vadd.f32 %v1778_v44, %v689_v45  ;;  %v770_v54 = vmul.f32 0.01, %v698_v47  ;;  %vm754_vm3 = vcmp.gt.f32.partialorder %v698_v47, 0.0 }
 0x1af   : > { %v1392_v48 = vpop.f32.mrf.mxu1 }
 0x1b0   : > { %v701_v49 = vadd.f32 %v1392_v48, %v1778_v44  ;;  %v768_v51 = vmul.f32 0.01, %v690_v46  ;;  %vm752_vm2 = vcmp.gt.f32.partialorder %v690_v46, 0.0  ;;  %v786_v62 = vsel %vm754_vm3, %v698_v47, %v770_v54  ;;  %v1063_v54 = vld [vmem:[%s1886_s7 + $0x38] sm:$0xff] }
 0x1b1   : > { %v692_v50 = vpop.f32.mrf.mxu1  ;;  %1109 = vperm.xlu1 %1477, %v1063_v54  }
 0x1b2   : > { %vm755_vm1 = vcmp.gt.f32.partialorder %v701_v49, 0.0  ;;  %v771_v52 = vmul.f32 0.01, %v701_v49  ;;  %v693_v53 = vadd.f32 %v1778_v44, %v692_v50  ;;  %v784_v60 = vsel %vm752_vm2, %v690_v46, %v768_v51 }
 0x1b3   : > { %v1395_v55 = vpop.f32.mrf.mxu1 }
 0x1b4   : > { %vm753_vm4 = vcmp.gt.f32.partialorder %v693_v53, 0.0  ;;  %v769_v56 = vmul.f32 0.01, %v693_v53  ;;  %v787_v57 = vsel %vm755_vm1, %v701_v49, %v771_v52  ;;  %v714_v63 = vadd.f32 %v1395_v55, %v1778_v44  ;;  %v1065_v55 = vld [vmem:[%s1886_s7 + $0x48] sm:$0xff] }
 0x1b5   : > { %v705_v58 = vpop.f32.mrf.mxu1  ;;  %v801_v2 = vpack.c.bf16 %v787_v57, %v786_v62  ;;  %v1067_v57 = vld [vmem:[%s1886_s7 + $0x58] sm:$0xff] }
 0x1b6   : > { %v706_v59 = vadd.f32 %v1778_v44, %v705_v58  ;;  %v785_v61 = vsel %vm753_vm4, %v693_v53, %v769_v56  ;;  %v774_v8 = vmul.f32 0.01, %v714_v63  ;;  %vm758_vm7 = vcmp.gt.f32.partialorder %v714_v63, 0.0  ;;  %v1066_v56 = vld [vmem:[%s1886_s7 + $0x50] sm:$0xff]  ;;  %v1068_v58 = vld [vmem:[%s1886_s7 + $0x60] sm:$0xff] }
 0x1b7   : > { %v1396_v0 = vpop.f32.mrf.mxu1  ;;  %v800_v1 = vpack.c.bf16 %v785_v61, %v784_v60  ;;  %v1070_v60 = vld [vmem:[%s1886_s7 + $0x70] sm:$0xff]  ;;  %v1071_v61 = vld [vmem:[%s1886_s7 + $0x78] sm:$0xff] }
 0x1b8   : > { %v717_v3 = vadd.f32 %v1396_v0, %v1778_v44  ;;  %v772_v5 = vmul.f32 0.01, %v706_v59  ;;  %vm756_vm6 = vcmp.gt.f32.partialorder %v706_v59, 0.0  ;;  %v790_v19 = vsel %vm758_vm7, %v714_v63, %v774_v8  ;;  %v1826_v63 = vld [vmem:[%s1885_s6] ss:$0 sm:$0xff] }
 0x1b9   : > { %v708_v4 = vpop.f32.mrf.mxu1  ;;  %1421 = vmatprep.mubr.bf16.mxu0 %v800_v1 }
 0x1ba   : > { %vm759_vm5 = vcmp.gt.f32.partialorder %v717_v3, 0.0  ;;  %v775_v6 = vmul.f32 0.01, %v717_v3  ;;  %v709_v7 = vadd.f32 %v1778_v44, %v708_v4  ;;  %1422 = vmatmul.mubr.bf16.vlgmr.msra.gmra.mxu0 %v801_v2  ;;  %v788_v15 = vsel %vm756_vm6, %v706_v59, %v772_v5  ;;  %v1069_v59 = vld [vmem:[%s1886_s7 + $0x68] sm:$0xff] }
 0x1bb   : > { %v1399_v9 = vpop.f32.mrf.mxu1 }
 0x1bc   : > { %vm757_vm8 = vcmp.gt.f32.partialorder %v709_v7, 0.0  ;;  %v773_v10 = vmul.f32 0.01, %v709_v7  ;;  %v730_v11 = vadd.f32 %v1399_v9, %v1778_v44  ;;  %v791_v13 = vsel %vm759_vm5, %v717_v3, %v775_v6 }
 0x1bd   : > { %v721_v12 = vpop.f32.mrf.mxu1  ;;  %v803_v22 = vpack.c.bf16 %v791_v13, %v790_v19 }
 0x1be   : > { %v722_v14 = vadd.f32 %v1778_v44, %v721_v12  ;;  %v789_v16 = vsel %vm757_vm8, %v709_v7, %v773_v10  ;;  %v778_v24 = vmul.f32 0.01, %v730_v11  ;;  %vm762_vm10 = vcmp.gt.f32.partialorder %v730_v11, 0.0 }
 0x1bf   : > { %v1400_v17 = vpop.f32.mrf.mxu1  ;;  %v802_v18 = vpack.c.bf16 %v789_v16, %v788_v15 }
 0x1c0   : > { %v776_v20 = vmul.f32 0.01, %v722_v14  ;;  %v733_v21 = vadd.f32 %v1400_v17, %v1778_v44  ;;  %vm760_vm9 = vcmp.gt.f32.partialorder %v722_v14, 0.0  ;;  %v794_v33 = vsel %vm762_vm10, %v730_v11, %v778_v24 }
 0x1c1   : > { %v724_v25 = vpop.f32.mrf.mxu1  ;;  %1425 = vmatprep.mubr.bf16.mxu0 %v802_v18 }
 0x1c2   : > { %vm763_vm11 = vcmp.gt.f32.partialorder %v733_v21, 0.0  ;;  %v779_v26 = vmul.f32 0.01, %v733_v21  ;;  %v725_v27 = vadd.f32 %v1778_v44, %v724_v25  ;;  %1426 = vmatmul.mubr.bf16.gmra.mxu0 %v803_v22  ;;  %v792_v31 = vsel %vm760_vm9, %v722_v14, %v776_v20 }
 0x1c3   : > { %v1403_v28 = vpop.f32.mrf.mxu1 }
 0x1c4   : > { %vm761_vm12 = vcmp.gt.f32.partialorder %v725_v27, 0.0  ;;  %v777_v29 = vmul.f32 0.01, %v725_v27  ;;  %v746_v30 = vadd.f32 %v1403_v28, %v1778_v44  ;;  %v795_v23 = vsel %vm763_vm11, %v733_v21, %v779_v26 }
 0x1c5   : > { %v737_v32 = vpop.f32.mrf.mxu1  ;;  %v805_v42 = vpack.c.bf16 %v795_v23, %v794_v33 }
 0x1c6   : > { %v738_v34 = vadd.f32 %v1778_v44, %v737_v32  ;;  %v793_v35 = vsel %vm761_vm12, %v725_v27, %v777_v29  ;;  %v782_v37 = vmul.f32 0.01, %v746_v30  ;;  %vm766_vm13 = vcmp.gt.f32.partialorder %v746_v30, 0.0 }
 0x1c7   : > { %v1404_v38 = vpop.f32.mrf.mxu1  ;;  %v804_v39 = vpack.c.bf16 %v793_v35, %v792_v31 }
 0x1c8   : > { %v780_v40 = vmul.f32 0.01, %v738_v34  ;;  %v749_v41 = vadd.f32 %v1404_v38, %v1778_v44  ;;  %vm764_vm14 = vcmp.gt.f32.partialorder %v738_v34, 0.0  ;;  %v798_v47 = vsel %vm766_vm13, %v746_v30, %v782_v37 }
 0x1c9   : > { %v740_v43 = vpop.f32.mrf.mxu1  ;;  %1429 = vmatprep.mubr.bf16.mxu0 %v804_v39 }
 0x1ca   : > { %vm767_vm15 = vcmp.gt.f32.partialorder %v749_v41, 0.0  ;;  %v783_v45 = vmul.f32 0.01, %v749_v41  ;;  %v741_v46 = vadd.f32 %v1778_v44, %v740_v43  ;;  %1430 = vmatmul.mubr.bf16.gmra.mxu0 %v805_v42  ;;  %v796_v49 = vsel %vm764_vm14, %v738_v34, %v780_v40  ;;  %v1064_v44 = vld [vmem:[%s1886_s7 + $0x40] sm:$0xff] }
 0x1cb   : > { %1114 = vperm.xlu1 %1477, %v1064_v44  }
 0x1cc   : > { %vm765_vm0 = vcmp.gt.f32.partialorder %v741_v46, 0.0  ;;  %v781_v48 = vmul.f32 0.01, %v741_v46  ;;  %v799_v50 = vsel %vm767_vm15, %v749_v41, %v783_v45 }
 0x1cd   : > { %v807_v52 = vpack.c.bf16 %v799_v50, %v798_v47 }
 0x1ce   : > { %v797_v51 = vsel %vm765_vm0, %v741_v46, %v781_v48 }
 0x1cf   : > { %v806_v53 = vpack.c.bf16 %v797_v51, %v796_v49  ;;  %1119 = vperm.xlu1 %1477, %v1065_v55  }
 0x1d1   : > { %1433 = vmatprep.mubr.bf16.mxu0 %v806_v53 }
 0x1d2   : > { %1434 = vmatmul.mubr.bf16.gmra.mxu0 %v807_v52 }
 0x1d3   : > { %1124 = vperm.xlu1 %1477, %v1066_v56  }
 0x1d7   : > { %1129 = vperm.xlu1 %1477, %v1067_v57  }
 0x1db   : > { %1134 = vperm.xlu1 %1477, %v1068_v58  }
 0x1df   : > { %1139 = vperm.xlu1 %1477, %v1069_v59  }
 0x1e3   : > { %1144 = vperm.xlu1 %1477, %v1070_v60  }
 0x1e7   : > { %1149 = vperm.xlu1 %1477, %v1071_v61  }
 0x27a   : > { %v1423_v62 = vpop.f32.mrf.mxu0 }
 0x27b   : > { %v922_v5 = vadd.f32 %v1423_v62, %v1826_v63 }
 0x27c   : > { %v913_v0 = vpop.f32.mrf.mxu0 }
 0x27d   : > { %v914_v1 = vadd.f32 %v1826_v63, %v913_v0  ;;  %v994_v13 = vmul.f32 0.01, %v922_v5  ;;  %vm978_vm3 = vcmp.gt.f32.partialorder %v922_v5, 0.0 }
 0x27e   : > { %v1424_v2 = vpop.f32.mrf.mxu0 }
 0x27f   : > { %vm976_vm1 = vcmp.gt.f32.partialorder %v914_v1, 0.0  ;;  %v992_v3 = vmul.f32 0.01, %v914_v1  ;;  %v925_v11 = vadd.f32 %v1424_v2, %v1826_v63  ;;  %v1010_v16 = vsel %vm978_vm3, %v922_v5, %v994_v13  ;;  %v1075_v2 = vpop.permute.xlu1 %1074 }
 0x280   : > { %v916_v4 = vpop.f32.mrf.mxu0 }
 0x281   : > { %v917_v6 = vadd.f32 %v1826_v63, %v916_v4  ;;  %v1008_v7 = vsel %vm976_vm1, %v914_v1, %v992_v3  ;;  %v995_v17 = vmul.f32 0.01, %v925_v11  ;;  %vm979_vm4 = vcmp.gt.f32.partialorder %v925_v11, 0.0  ;;  %v1189_v1 = vld [vmem:[#allocation2] sm:$0x1] }
 0x282   : > { %v1427_v8 = vpop.f32.mrf.mxu0  ;;  %1024 = vxpose.xlu0.b32.start [1/16] %v1008_v7, 128 }
 0x283   : > { %vm977_vm2 = vcmp.gt.f32.partialorder %v917_v6, 0.0  ;;  %v993_v9 = vmul.f32 0.01, %v917_v6  ;;  %v1011_v20 = vsel %vm979_vm4, %v925_v11, %v995_v17  ;;  %v938_v24 = vadd.f32 %v1427_v8, %v1826_v63  ;;  %v1080_v3 = vpop.permute.xlu1 %1079 }
 0x284   : > { %v929_v10 = vpop.f32.mrf.mxu0 }
 0x285   : > { %v1009_v12 = vsel %vm977_vm2, %v917_v6, %v993_v9  ;;  %v930_v15 = vadd.f32 %v1826_v63, %v929_v10  ;;  %v998_v30 = vmul.f32 0.01, %v938_v24  ;;  %vm982_vm7 = vcmp.gt.f32.partialorder %v938_v24, 0.0 }
 0x286   : > { %v1428_v14 = vpop.f32.mrf.mxu0  ;;  %1025 = vxpose.xlu0.b32.cont [2/16] %v1009_v12, 128 }
 0x287   : > { %v996_v21 = vmul.f32 0.01, %v930_v15  ;;  %vm980_vm5 = vcmp.gt.f32.partialorder %v930_v15, 0.0  ;;  %v941_v28 = vadd.f32 %v1428_v14, %v1826_v63  ;;  %v1014_v33 = vsel %vm982_vm7, %v938_v24, %v998_v30  ;;  %v1085_v4 = vpop.permute.xlu1 %1084 }
 0x288   : > { %v932_v18 = vpop.f32.mrf.mxu0 }
 0x289   : > { %v933_v19 = vadd.f32 %v1826_v63, %v932_v18  ;;  %v1012_v25 = vsel %vm980_vm5, %v930_v15, %v996_v21  ;;  %v999_v23 = vmul.f32 0.01, %v941_v28  ;;  %vm983_vm8 = vcmp.gt.f32.partialorder %v941_v28, 0.0 }
 0x28a   : > { %1026 = vxpose.xlu0.b32.cont [3/16] %v1010_v16, 128  ;;  %v1431_v22 = vpop.f32.mrf.mxu0 }
 0x28b   : > { %v997_v26 = vmul.f32 0.01, %v933_v19  ;;  %vm981_vm6 = vcmp.gt.f32.partialorder %v933_v19, 0.0  ;;  %v1015_v37 = vsel %vm983_vm8, %v941_v28, %v999_v23  ;;  %v954_v40 = vadd.f32 %v1431_v22, %v1826_v63  ;;  %v1090_v6 = vpop.permute.xlu1 %1089 }
 0x28c   : > { %v945_v27 = vpop.f32.mrf.mxu0 }
 0x28d   : > { %v1013_v29 = vsel %vm981_vm6, %v933_v19, %v997_v26  ;;  %v946_v32 = vadd.f32 %v1826_v63, %v945_v27  ;;  %v1002_v47 = vmul.f32 0.01, %v954_v40  ;;  %vm986_vm11 = vcmp.gt.f32.partialorder %v954_v40, 0.0 }
 0x28e   : > { %1027 = vxpose.xlu0.b32.cont [4/16] %v1011_v20, 128  ;;  %v1432_v31 = vpop.f32.mrf.mxu0 }
 0x28f   : > { %v1000_v38 = vmul.f32 0.01, %v946_v32  ;;  %vm984_vm9 = vcmp.gt.f32.partialorder %v946_v32, 0.0  ;;  %v957_v45 = vadd.f32 %v1432_v31, %v1826_v63  ;;  %v1018_v50 = vsel %vm986_vm11, %v954_v40, %v1002_v47  ;;  %v1095_v7 = vpop.permute.xlu1 %1094 }
 0x290   : > { %v948_v34 = vpop.f32.mrf.mxu0 }
 0x291   : > { %v949_v35 = vadd.f32 %v1826_v63, %v948_v34  ;;  %v1016_v41 = vsel %vm984_vm9, %v946_v32, %v1000_v38  ;;  %v1003_v51 = vmul.f32 0.01, %v957_v45  ;;  %vm987_vm12 = vcmp.gt.f32.partialorder %v957_v45, 0.0 }
 0x292   : > { %1028 = vxpose.xlu0.b32.cont [5/16] %v1012_v25, 128  ;;  %v1435_v39 = vpop.f32.mrf.mxu0 }
 0x293   : > { %v1001_v42 = vmul.f32 0.01, %v949_v35  ;;  %vm985_vm10 = vcmp.gt.f32.partialorder %v949_v35, 0.0  ;;  %v1019_v54 = vsel %vm987_vm12, %v957_v45, %v1003_v51  ;;  %v970_v55 = vadd.f32 %v1435_v39, %v1826_v63  ;;  %v1100_v10 = vpop.permute.xlu1 %1099 }
 0x294   : > { %v961_v43 = vpop.f32.mrf.mxu0 }
 0x295   : > { %v1017_v46 = vsel %vm985_vm10, %v949_v35, %v1001_v42  ;;  %v962_v49 = vadd.f32 %v1826_v63, %v961_v43  ;;  %v1006_v60 = vmul.f32 0.01, %v970_v55  ;;  %vm990_vm15 = vcmp.gt.f32.partialorder %v970_v55, 0.0 }
 0x296   : > { %1029 = vxpose.xlu0.b32.cont [6/16] %v1013_v29, 128  ;;  %v1436_v48 = vpop.f32.mrf.mxu0 }
 0x297   : > { %v1004_v44 = vmul.f32 0.01, %v962_v49  ;;  %vm988_vm13 = vcmp.gt.f32.partialorder %v962_v49, 0.0  ;;  %v973_v58 = vadd.f32 %v1436_v48, %v1826_v63  ;;  %v1022_v61 = vsel %vm990_vm15, %v970_v55, %v1006_v60  ;;  %v1105_v12 = vpop.permute.xlu1 %1104 }
 0x298   : > { %v964_v52 = vpop.f32.mrf.mxu0 }
 0x299   : > { %v965_v53 = vadd.f32 %v1826_v63, %v964_v52  ;;  %v1020_v56 = vsel %vm988_vm13, %v962_v49, %v1004_v44  ;;  %v1007_v62 = vmul.f32 0.01, %v973_v58  ;;  %vm991_vm0 = vcmp.gt.f32.partialorder %v973_v58, 0.0 }
 0x29a   : > { %1030 = vxpose.xlu0.b32.cont [7/16] %v1014_v33, 128 }
 0x29b   : > { %v1005_v57 = vmul.f32 0.01, %v965_v53  ;;  %vm989_vm14 = vcmp.gt.f32.partialorder %v965_v53, 0.0  ;;  %v1023_v0 = vsel %vm991_vm0, %v973_v58, %v1007_v62  ;;  %v1110_v15 = vpop.permute.xlu1 %1109 }
 0x29d   : > { %v1021_v59 = vsel %vm989_vm14, %v965_v53, %v1005_v57 }
 0x29e   : > { %1031 = vxpose.xlu0.b32.cont [8/16] %v1015_v37, 128 }
 0x29f   : > { %v1115_v17 = vpop.permute.xlu1 %1114 }
 0x2a2   : > { %1032 = vxpose.xlu0.b32.cont [9/16] %v1016_v41, 128 }
 0x2a3   : > { %v1120_v21 = vpop.permute.xlu1 %1119 }
 0x2a6   : > { %1033 = vxpose.xlu0.b32.cont [10/16] %v1017_v46, 128 }
 0x2a7   : > { %v1125_v28 = vpop.permute.xlu1 %1124 }
 0x2aa   : > { %1034 = vxpose.xlu0.b32.cont [11/16] %v1018_v50, 128 }
 0x2ab   : > { %v1130_v32 = vpop.permute.xlu1 %1129 }
 0x2ae   : > { %1035 = vxpose.xlu0.b32.cont [12/16] %v1019_v54, 128 }
 0x2af   : > { %v1135_v38 = vpop.permute.xlu1 %1134 }
 0x2b2   : > { %1036 = vxpose.xlu0.b32.cont [13/16] %v1020_v56, 128 }
 0x2b3   : > { %v1140_v43 = vpop.permute.xlu1 %1139 }
 0x2b6   : > { %1037 = vxpose.xlu0.b32.cont [14/16] %v1021_v59, 128 }
 0x2b7   : > { %v1145_v52 = vpop.permute.xlu1 %1144 }
 0x2ba   : > { %1038 = vxpose.xlu0.b32.cont [15/16] %v1022_v61, 128 }
 0x2bb   : > { %v1150_v59 = vpop.permute.xlu1 %1149 }
 0x2be   : > { %1039 = vxpose.xlu0.b32.end [16/16] %v1023_v0, 128 }
 0x2e7   : > { %1478 = vset.pattern.permute.xlu0 %v1566_v36 }
 0x2e8   : > { %1192 = vperm.xlu0 %1478, %v1189_v1  }
 0x2fe   : > { %v1040_v5 = vpop.trf.xlu0 }
 0x2ff   : > { %v1152_v36 = vmul.f32 %v1075_v2, %v1040_v5 }
 0x302   : > { %v1041_v63 = vpop.trf.xlu0 }
 0x303   : > { %v1153_v19 = vmul.f32 %v1080_v3, %v1041_v63 }
 0x305   : > { %v1168_v22 = vadd.f32 %v1153_v19, %v1152_v36 }
 0x306   : > { %v1042_v8 = vpop.trf.xlu0 }
 0x307   : > { %v1154_v24 = vmul.f32 %v1085_v4, %v1042_v8  ;;  %v1195_v4 = vlaneseq }
 0x309   : > { %v1169_v26 = vadd.f32 %v1168_v22, %v1154_v24 }
 0x30a   : > { %v1043_v9 = vpop.trf.xlu0 }
 0x30b   : > { %v1155_v27 = vmul.f32 %v1090_v6, %v1043_v9  ;;  %v1196_v6 = vshrl.u32 %v1195_v4, 7 }
 0x30d   : > { %v1170_v29 = vadd.f32 %v1169_v26, %v1155_v27 }
 0x30e   : > { %v1044_v11 = vpop.trf.xlu0 }
 0x30f   : > { %v1156_v30 = vmul.f32 %v1095_v7, %v1044_v11  ;;  %v1197_v7 = vsub.s32 0, %v1196_v6 }
 0x311   : > { %v1171_v33 = vadd.f32 %v1170_v29, %v1156_v30 }
 0x312   : > { %v1045_v13 = vpop.trf.xlu0 }
 0x313   : > { %v1157_v23 = vmul.f32 %v1100_v10, %v1045_v13 }
 0x315   : > { %v1172_v35 = vadd.f32 %v1171_v33, %v1157_v23 }
 0x316   : > { %v1046_v14 = vpop.trf.xlu0 }
 0x317   : > { %v1158_v37 = vmul.f32 %v1105_v12, %v1046_v14 }
 0x319   : > { %v1173_v39 = vadd.f32 %v1172_v35, %v1158_v37 }
 0x31a   : > { %v1047_v16 = vpop.trf.xlu0 }
 0x31b   : > { %v1159_v40 = vmul.f32 %v1110_v15, %v1047_v16 }
 0x31d   : > { %v1174_v45 = vadd.f32 %v1173_v39, %v1159_v40 }
 0x31e   : > { %v1048_v18 = vpop.trf.xlu0 }
 0x31f   : > { %v1160_v42 = vmul.f32 %v1115_v17, %v1048_v18 }
 0x321   : > { %v1175_v47 = vadd.f32 %v1174_v45, %v1160_v42 }
 0x322   : > { %v1049_v20 = vpop.trf.xlu0 }
 0x323   : > { %v1161_v46 = vmul.f32 %v1120_v21, %v1049_v20 }
 0x325   : > { %v1176_v50 = vadd.f32 %v1175_v47, %v1161_v46 }
 0x326   : > { %v1050_v25 = vpop.trf.xlu0 }
 0x327   : > { %v1162_v48 = vmul.f32 %v1125_v28, %v1050_v25 }
 0x329   : > { %v1177_v53 = vadd.f32 %v1176_v50, %v1162_v48 }
 0x32a   : > { %v1051_v31 = vpop.trf.xlu0 }
 0x32b   : > { %v1163_v51 = vmul.f32 %v1130_v32, %v1051_v31 }
 0x32d   : > { %v1178_v44 = vadd.f32 %v1177_v53, %v1163_v51 }
 0x32e   : > { %v1052_v34 = vpop.trf.xlu0 }
 0x32f   : > { %v1164_v54 = vmul.f32 %v1135_v38, %v1052_v34 }
 0x331   : > { %v1179_v57 = vadd.f32 %v1178_v44, %v1164_v54 }
 0x332   : > { %v1053_v41 = vpop.trf.xlu0 }
 0x333   : > { %v1165_v55 = vmul.f32 %v1140_v43, %v1053_v41 }
 0x335   : > { %v1180_v60 = vadd.f32 %v1179_v57, %v1165_v55 }
 0x336   : > { %v1054_v49 = vpop.trf.xlu0 }
 0x337   : > { %v1166_v58 = vmul.f32 %v1145_v52, %v1054_v49 }
 0x339   : > { %v1181_v62 = vadd.f32 %v1180_v60, %v1166_v58 }
 0x33a   : > { %v1055_v56 = vpop.trf.xlu0 }
 0x33b   : > { %v1167_v61 = vmul.f32 %v1150_v59, %v1055_v56 }
 0x33d   : > { %v1182_v0 = vadd.f32 %v1181_v62, %v1167_v61 }
 0x33f   : > { %v1183_v1 = vrot.slane %v1182_v0, 4 }
 0x341   : > { %v1184_v2 = vadd.f32 %v1183_v1, %v1182_v0 }
 0x343   : > { %v1185_v3 = vrot.slane %v1184_v2, 2 }
 0x345   : > { %v1186_v5 = vadd.f32 %v1185_v3, %v1184_v2 }
 0x347   : > { %v1187_v63 = vrot.slane %v1186_v5, 1 }
 0x349   : > { %v1188_v9 = vadd.f32 %v1187_v63, %v1186_v5 }
 0x363   : > { %v1193_v8 = vpop.permute.xlu0 %1192 }
 0x364   : > { %v1198_v10 = vrot.slane %v1193_v8, %v1197_v7 }
 0x366   : > { %v1199_v11 = vadd.f32 %v1198_v10, %v1188_v9 }
 0x368   : > { %1200 = vst [vmem:[%s327_s22] sm:$0x1] %v1199_v11 }
 0x369   : > { %1517 = shalt.err (!%p1514_p3)
}
 0x36a   : > { %s1518_s15 = scalar_lea.hbm %s1212_s27, 16  ;;  %s1522_s18 = scalar_lea.hbm %s1888_s9, 32 }
 0x36b   : > { %p1519_p4 = scmp.ne.s32.totalorder %s1212_s27, %s1518_s15  ;;  %p1523_p9 = scmp.lt.s32.totalorder %s1212_s27, %s1888_s9 }
 0x36c   : > { %p1524_p10 = scmp.lt.s32.totalorder %s1522_s18, %s1518_s15 }
 0x36d   : > { %p1520_p7 = pnand %p1519_p4, %p1656_p5 }
 0x36e   : > { %p1525_p11 = por %p1524_p10, %p1523_p9 }
 0x36f   : > { %p1521_p8 = pneg %p1520_p7 }
 0x371   : > { %p1526_p12 = pnand %p1525_p11, %p1521_p8 }
 0x373   : > { %1529 = shalt.err (!%p1526_p12)
}
 0x374   : > { %1437 = dma.vmem_to_hbm [thread:$0]  (%p1656_p5), %s1215_s23, 16, %s1212_s27, %s1202_s28  }
 0x375 PF: > { %p1443_p13 = scmp.ge.s32.totalorder %s1564_s14, 2  ;;  %s1226_s26 = sand.u32 1, %s1552_s11  }
 0x376   : > { %s1227_s29 = scalar_lea.sflag [#allocation4], %s1226_s26 }
 0x377   : > { %p1440_p0 = pnand %p1443_p13, %p1660_p6 }
 0x379   : > { %p1441_p1 = pneg %p1440_p0 }
 0x37b   : > { %1547 = dma.done.wait (%p1441_p1), %s1227_s29, 16  }
 0x37c   : > { %1549 = vsyncadd (%p1441_p1), %s1227_s29, 4294967280  ;;  %p21_p2 = scmp.ge.s32.totalorder %s1644_s16, 4   ;;  %s1891_s11 = smov %s1556_s12 }
 0x37d   : > { %s1892_s12 = smov %s1560_s13  ;;  %s1893_s13 = smov %s1654_s19 }
 0x37e   : > { %s1894_s14 = smov %s1644_s16  ;;  %23 = sbr.rel (!%p21_p2) target bundleno = 6 (0x6), region = 91 }
 0x383   :  { %1231 = vsyncpa [#allocation4], 1 }
 0x384   :  { %1233 = vsyncpa [#allocation4 + $0x1], 1 }

</bundles_post_ra>
